<compile_context>
chip_gen: v7x
topology: tpu7x:2x2x1
jax: 0.10.0
libtpu: 0.0.40
codegen_flags: <defaults>
</compile_context>

<pallas_src>
import jax
import jax.numpy as jnp
from jax.experimental import pallas as pl
from jax.experimental.pallas import tpu as pltpu

EMB = 18          # embedding_size; fcn expects 5*EMB == 90
TILE_B = 1024     # max batch rows per grid step (flattened layout)


def _cdiv(a, b):
    return (a + b - 1) // b


def _round_up(x, m):
    return ((x + m - 1) // m) * m


# ------------------------------------------------------------------------
# Fused kernel: 3-layer fcn MLP (history sum folded into the MXU) + sim branch
# ------------------------------------------------------------------------
def fused_kernel(fcn_in_ref, hist_ref, id1_ref, id2_ref,
                 w1m_ref, w1h_ref, b1_ref, w2_ref, b2_ref, w3_ref, b3_ref,
                 y_ref, sim_ref):
    f32 = jnp.float32

    # Layer 1:
    #   [uid|mid|cat] @ W1[:3E]   +   flat_history @ tile_T(W1[3E:5E])
    # The second dot is exactly  (sum_t item_his[t]) @ W1[3E:5E].
    h1 = (jnp.dot(fcn_in_ref[...], w1m_ref[...], preferred_element_type=f32)
          + jnp.dot(hist_ref[...], w1h_ref[...], preferred_element_type=f32)
          + b1_ref[...])
    h1 = jnp.maximum(h1, 0.0)

    # Layer 2
    h2 = jnp.maximum(
        jnp.dot(h1, w2_ref[...], preferred_element_type=f32) + b2_ref[...], 0.0)

    # Layer 3 -> scalar per row, stored as a 1-lane output (tiny masked vst).
    y_ref[...] = jnp.dot(h2, w3_ref[...], preferred_element_type=f32) + b3_ref[...]

    # Similarity branch: x = e1 + e2 + e1*e2 (pure VPU elementwise)
    e1 = id1_ref[...]
    e2 = id2_ref[...]
    sim_ref[...] = e1 + e2 + e1 * e2


# ------------------------------------------------------------------------
# Parameters (PyTorch Linear stores W as [out, in]; we keep [in, out])
# ------------------------------------------------------------------------
def init_params(key, n_uid, n_mid, n_cat, embedding_size):
    E = embedding_size
    ks = iter(jax.random.split(key, 12))

    def w(shape, scale=0.05):
        return jax.random.normal(next(ks), shape, jnp.float32) * scale

    return {
        "uid_emb": w((n_uid, E)),
        "mid_emb": w((n_mid, E)),
        "cat_emb": w((n_cat, E)),
        # fcn: Linear(90,200) -> ReLU -> Linear(200,80) -> ReLU -> Linear(80,1)
        "fcn_w1": w((5 * E, 200)), "fcn_b1": w((1, 200)),
        "fcn_w2": w((200, 80)),    "fcn_b2": w((1, 80)),
        "fcn_w3": w((80, 1)),      "fcn_b3": w((1, 1)),
    }


def prepack_params(params, embedding_size, seq_len):
    """One-time kernel-layout prepack.

    * W1[:3E]       -> operand for the packed [uid|mid|cat] input.
    * W1[3E:5E]     -> tiled T times so the history sum folds into the matmul.
    """
    E = embedding_size
    w1 = params["fcn_w1"]                                  # [5E, 200]
    return {
        "w1_main": w1[:3 * E],                             # [3E, 200]
        "w1_hist": jnp.tile(w1[3 * E:5 * E], (seq_len, 1)),  # [T*2E, 200]
        "b1": params["fcn_b1"],
        "w2": params["fcn_w2"], "b2": params["fcn_b2"],
        "w3": params["fcn_w3"], "b3": params["fcn_b3"],
    }


def _choose_tile_b(B, T, E):
    """Adaptive batch tile: sublane-multiple, >=2 grid steps when possible
    (v7x has 2 TensorCores), low padding waste, conservative VMEM footprint."""
    B8 = _round_up(max(B, 1), 8)
    # streamed f32 bytes per row (fcn_in + hist + id1 + id2 + y + sim), x2 buffers
    row_bytes = 4 * (3 * E + T * 2 * E + 2 * E + 1 + E)
    vmem_cap = max(8, ((12 << 20) // (2 * row_bytes)) // 8 * 8)
    max_tile = min(TILE_B, vmem_cap, B8)
    n_tiles = max(_cdiv(B8, max_tile), 2 if B8 > 16 else 1)
    return _round_up(_cdiv(B8, n_tiles), 8)


# ------------------------------------------------------------------------
# Forward pass (mirrors Model_DNN_SIM_DeepKernelGP.forward)
# ------------------------------------------------------------------------
def forward(params, packed, uid_batch_ph, mid_batch_ph, mid_his_batch_ph,
            cat_batch_ph, cat_his_batch_ph, cat_id_1, cat_id_2):
    # Embedding lookups (data-dependent gathers stay in JAX)
    uid_eb = jnp.take(params["uid_emb"], uid_batch_ph, axis=0)          # [B, E]
    mid_eb = jnp.take(params["mid_emb"], mid_batch_ph, axis=0)          # [B, E]
    cat_eb = jnp.take(params["cat_emb"], cat_batch_ph, axis=0)          # [B, E]
    mid_his_eb = jnp.take(params["mid_emb"], mid_his_batch_ph, axis=0)  # [B, T, E]
    cat_his_eb = jnp.take(params["cat_emb"], cat_his_batch_ph, axis=0)  # [B, T, E]
    id1_eb = jnp.take(params["cat_emb"], cat_id_1, axis=0)              # [B, E]
    id2_eb = jnp.take(params["cat_emb"], cat_id_2, axis=0)              # [B, E]

    B, E = uid_eb.shape
    T = mid_his_eb.shape[1]
    assert packed["w1_hist"].shape[0] == T * 2 * E, "prepack seq_len mismatch"

    # Lane-pack: single contiguous stream for the non-history fcn inputs,
    # flattened [B, T*2E] stream for the history (sum folded into the matmul).
    fcn_in = jnp.concatenate([uid_eb, mid_eb, cat_eb], axis=1)          # [B, 3E]
    hist_flat = jnp.concatenate(
        [mid_his_eb, cat_his_eb], axis=2).reshape(B, T * 2 * E)         # [B, T*2E]

    tile_b = _choose_tile_b(B, T, E)
    Bp = _round_up(B, tile_b)

    def padb(x):
        if x.shape[0] == Bp:
            return x
        return jnp.pad(x, ((0, Bp - x.shape[0]), (0, 0)))

    fcn_in, hist_flat, id1_eb, id2_eb = map(padb, (fcn_in, hist_flat, id1_eb, id2_eb))

    grid = (Bp // tile_b,)

    def stream(width):
        return pl.BlockSpec((tile_b, width), lambda i: (i, 0))

    def resident(arr):
        # whole-array block, same block every grid step -> stays in VMEM
        return pl.BlockSpec(arr.shape, lambda i: (0,) * arr.ndim)

    in_specs = [
        stream(3 * E),            # fcn_in
        stream(T * 2 * E),        # hist_flat
        stream(E),                # id1
        stream(E),                # id2
        resident(packed["w1_main"]), resident(packed["w1_hist"]),
        resident(packed["b1"]),
        resident(packed["w2"]), resident(packed["b2"]),
        resident(packed["w3"]), resident(packed["b3"]),
    ]
    out_specs = (pl.BlockSpec((tile_b, 1), lambda i: (i, 0)),
                 pl.BlockSpec((tile_b, E), lambda i: (i, 0)))
    out_shape = (jax.ShapeDtypeStruct((Bp, 1), jnp.float32),
                 jax.ShapeDtypeStruct((Bp, E), jnp.float32))

    y_pad, sim_pad = pl.pallas_call(
        fused_kernel,
        grid=grid,
        in_specs=in_specs,
        out_specs=out_specs,
        out_shape=out_shape,
        compiler_params=pltpu.CompilerParams(
            dimension_semantics=("parallel",)),
    )(fcn_in, hist_flat, id1_eb, id2_eb,
      packed["w1_main"], packed["w1_hist"], packed["b1"],
      packed["w2"], packed["b2"], packed["w3"], packed["b3"])

    y_logits = y_pad[:B]         # [B, 1]
    sim_input = sim_pad[:B]      # [B, E]
    return y_logits, sim_input


# ------------------------------------------------------------------------
# Pure-JAX reference (mirrors the PyTorch forward exactly)
# ------------------------------------------------------------------------
def forward_reference(params, uid_batch_ph, mid_batch_ph, mid_his_batch_ph,
                      cat_batch_ph, cat_his_batch_ph, cat_id_1, cat_id_2):
    uid_eb = jnp.take(params["uid_emb"], uid_batch_ph, axis=0)
    mid_eb = jnp.take(params["mid_emb"], mid_batch_ph, axis=0)
    cat_eb = jnp.take(params["cat_emb"], cat_batch_ph, axis=0)
    mid_his_eb = jnp.take(params["mid_emb"], mid_his_batch_ph, axis=0)
    cat_his_eb = jnp.take(params["cat_emb"], cat_his_batch_ph, axis=0)
    id1_eb = jnp.take(params["cat_emb"], cat_id_1, axis=0)
    id2_eb = jnp.take(params["cat_emb"], cat_id_2, axis=0)

    item_eb = jnp.concatenate([mid_eb, cat_eb], axis=1)
    item_his_eb = jnp.concatenate([mid_his_eb, cat_his_eb], axis=2)
    item_his_eb_sum = jnp.sum(item_his_eb, axis=1)
    inp = jnp.concatenate([uid_eb, item_eb, item_his_eb_sum], axis=1)

    h = jnp.maximum(inp @ params["fcn_w1"] + params["fcn_b1"], 0.0)
    h = jnp.maximum(h @ params["fcn_w2"] + params["fcn_b2"], 0.0)
    y = h @ params["fcn_w3"] + params["fcn_b3"]

    sim_input = id1_eb + id2_eb + id1_eb * id2_eb
    return y, sim_input


# ------------------------------------------------------------------------
if __name__ == "__main__":
    key = jax.random.PRNGKey(0)
    B, T = 4, 8
    E = EMB                       # 18 -> fcn input width 5*E == 90
    n_uid, n_mid, n_cat = 32, 64, 48

    pkey, ikey = jax.random.split(key)
    params = init_params(pkey, n_uid, n_mid, n_cat, E)
    packed = prepack_params(params, E, T)

    ks = iter(jax.random.split(ikey, 8))
    uid_batch_ph = jax.random.randint(next(ks), (B,), 0, n_uid)
    mid_batch_ph = jax.random.randint(next(ks), (B,), 0, n_mid)
    mid_his_batch_ph = jax.random.randint(next(ks), (B, T), 0, n_mid)
    cat_batch_ph = jax.random.randint(next(ks), (B,), 0, n_cat)
    cat_his_batch_ph = jax.random.randint(next(ks), (B, T), 0, n_cat)
    cat_id_1 = jax.random.randint(next(ks), (B,), 0, n_cat)
    cat_id_2 = jax.random.randint(next(ks), (B,), 0, n_cat)

    y_logits, sim_input = forward(params, packed, uid_batch_ph, mid_batch_ph,
                                  mid_his_batch_ph, cat_batch_ph,
                                  cat_his_batch_ph, cat_id_1, cat_id_2)
    jax.block_until_ready((y_logits, sim_input))

    y_ref, sim_ref = forward_reference(params, uid_batch_ph, mid_batch_ph,
                                       mid_his_batch_ph, cat_batch_ph,
                                       cat_his_batch_ph, cat_id_1, cat_id_2)

    assert y_logits.shape == (B, 1) and sim_input.shape == (B, E)
    assert jnp.allclose(y_logits, y_ref, atol=1e-5, rtol=1e-5)
    assert jnp.allclose(sim_input, sim_ref, atol=1e-5, rtol=1e-5)

    print("KERNEL_OK")
</pallas_src>

<mosaic_0001>
module attributes {stable_mosaic.version = 11 : i64} {
  func.func @fused_kernel(%arg0: i32, %arg1: memref<8x54xf32, #tpu.memory_space<vmem>>, %arg2: memref<8x288xf32, #tpu.memory_space<vmem>>, %arg3: memref<8x18xf32, #tpu.memory_space<vmem>>, %arg4: memref<8x18xf32, #tpu.memory_space<vmem>>, %arg5: memref<54x200xf32, #tpu.memory_space<vmem>>, %arg6: memref<288x200xf32, #tpu.memory_space<vmem>>, %arg7: memref<1x200xf32, #tpu.memory_space<vmem>>, %arg8: memref<200x80xf32, #tpu.memory_space<vmem>>, %arg9: memref<1x80xf32, #tpu.memory_space<vmem>>, %arg10: memref<80x1xf32, #tpu.memory_space<vmem>>, %arg11: memref<1x1xf32, #tpu.memory_space<vmem>>, %arg12: memref<8x1xf32, #tpu.memory_space<vmem>>, %arg13: memref<8x18xf32, #tpu.memory_space<vmem>>) attributes {dimension_semantics = [#tpu.dimension_semantics<parallel>], iteration_bounds = array<i64: 1>, scalar_prefetch = 0 : i64, scratch_operands = 0 : i64, tpu.core_type = #tpu.core_type<tc>, window_params = [{transform_indices = @transform_0, window_bounds = array<i64: 8, 54>}, {transform_indices = @transform_1, window_bounds = array<i64: 8, 288>}, {transform_indices = @transform_2, window_bounds = array<i64: 8, 18>}, {transform_indices = @transform_3, window_bounds = array<i64: 8, 18>}, {pipeline_mode = #tpu.pipeline_mode<synchronous>, transform_indices = @transform_4, window_bounds = array<i64: 54, 200>}, {pipeline_mode = #tpu.pipeline_mode<synchronous>, transform_indices = @transform_5, window_bounds = array<i64: 288, 200>}, {pipeline_mode = #tpu.pipeline_mode<synchronous>, transform_indices = @transform_6, window_bounds = array<i64: 1, 200>}, {pipeline_mode = #tpu.pipeline_mode<synchronous>, transform_indices = @transform_7, window_bounds = array<i64: 200, 80>}, {pipeline_mode = #tpu.pipeline_mode<synchronous>, transform_indices = @transform_8, window_bounds = array<i64: 1, 80>}, {pipeline_mode = #tpu.pipeline_mode<synchronous>, transform_indices = @transform_9, window_bounds = array<i64: 80, 1>}, {pipeline_mode = #tpu.pipeline_mode<synchronous>, transform_indices = @transform_10, window_bounds = array<i64: 1, 1>}, {transform_indices = @transform_11, window_bounds = array<i64: 8, 1>}, {transform_indices = @transform_12, window_bounds = array<i64: 8, 18>}]} {
    %c0 = arith.constant 0 : index
    %c0_0 = arith.constant 0 : index
    %0 = vector.load %arg1[%c0, %c0_0] : memref<8x54xf32, #tpu.memory_space<vmem>>, vector<8x54xf32>
    %c0_1 = arith.constant 0 : index
    %c0_2 = arith.constant 0 : index
    %1 = vector.load %arg5[%c0_1, %c0_2] : memref<54x200xf32, #tpu.memory_space<vmem>>, vector<54x200xf32>
    %cst = arith.constant dense<0.000000e+00> : vector<8x200xf32>
    %2 = tpu.matmul %0, %1, %cst {dimension_numbers = #tpu.dot_dimension_numbers<[1], [0], [0], [1], [0, 0, 1, 1], [], []>} : vector<8x54xf32>, vector<54x200xf32>, vector<8x200xf32> -> vector<8x200xf32>
    %c0_3 = arith.constant 0 : index
    %c0_4 = arith.constant 0 : index
    %3 = vector.load %arg2[%c0_3, %c0_4] : memref<8x288xf32, #tpu.memory_space<vmem>>, vector<8x288xf32>
    %c0_5 = arith.constant 0 : index
    %c0_6 = arith.constant 0 : index
    %4 = vector.load %arg6[%c0_5, %c0_6] : memref<288x200xf32, #tpu.memory_space<vmem>>, vector<288x200xf32>
    %cst_7 = arith.constant dense<0.000000e+00> : vector<8x200xf32>
    %5 = tpu.matmul %3, %4, %cst_7 {dimension_numbers = #tpu.dot_dimension_numbers<[1], [0], [0], [1], [0, 0, 1, 1], [], []>} : vector<8x288xf32>, vector<288x200xf32>, vector<8x200xf32> -> vector<8x200xf32>
    %6 = arith.addf %2, %5 : vector<8x200xf32>
    %c0_8 = arith.constant 0 : index
    %c0_9 = arith.constant 0 : index
    %7 = vector.load %arg7[%c0_8, %c0_9] : memref<1x200xf32, #tpu.memory_space<vmem>>, vector<1x200xf32>
    %8 = vector.broadcast %7 : vector<1x200xf32> to vector<8x200xf32>
    %9 = arith.addf %6, %8 : vector<8x200xf32>
    %cst_10 = arith.constant 0.000000e+00 : f32
    %10 = vector.broadcast %cst_10 : f32 to vector<8x200xf32>
    %11 = arith.maximumf %9, %10 : vector<8x200xf32>
    %c0_11 = arith.constant 0 : index
    %c0_12 = arith.constant 0 : index
    %12 = vector.load %arg8[%c0_11, %c0_12] : memref<200x80xf32, #tpu.memory_space<vmem>>, vector<200x80xf32>
    %cst_13 = arith.constant dense<0.000000e+00> : vector<8x80xf32>
    %13 = tpu.matmul %11, %12, %cst_13 {dimension_numbers = #tpu.dot_dimension_numbers<[1], [0], [0], [1], [0, 0, 1, 1], [], []>} : vector<8x200xf32>, vector<200x80xf32>, vector<8x80xf32> -> vector<8x80xf32>
    %c0_14 = arith.constant 0 : index
    %c0_15 = arith.constant 0 : index
    %14 = vector.load %arg9[%c0_14, %c0_15] : memref<1x80xf32, #tpu.memory_space<vmem>>, vector<1x80xf32>
    %15 = vector.broadcast %14 : vector<1x80xf32> to vector<8x80xf32>
    %16 = arith.addf %13, %15 : vector<8x80xf32>
    %cst_16 = arith.constant 0.000000e+00 : f32
    %17 = vector.broadcast %cst_16 : f32 to vector<8x80xf32>
    %18 = arith.maximumf %16, %17 : vector<8x80xf32>
    %c0_17 = arith.constant 0 : index
    %c0_18 = arith.constant 0 : index
    %19 = vector.load %arg10[%c0_17, %c0_18] : memref<80x1xf32, #tpu.memory_space<vmem>>, vector<80x1xf32>
    %cst_19 = arith.constant dense<0.000000e+00> : vector<8x1xf32>
    %20 = tpu.matmul %18, %19, %cst_19 {dimension_numbers = #tpu.dot_dimension_numbers<[1], [0], [0], [1], [0, 0, 1, 1], [], []>} : vector<8x80xf32>, vector<80x1xf32>, vector<8x1xf32> -> vector<8x1xf32>
    %c0_20 = arith.constant 0 : index
    %c0_21 = arith.constant 0 : index
    %21 = vector.load %arg11[%c0_20, %c0_21] : memref<1x1xf32, #tpu.memory_space<vmem>>, vector<1x1xf32>
    %22 = vector.broadcast %21 : vector<1x1xf32> to vector<8x1xf32>
    %23 = arith.addf %20, %22 : vector<8x1xf32>
    %c0_22 = arith.constant 0 : index
    %c0_23 = arith.constant 0 : index
    %24 = vector.load %arg12[%c0_22, %c0_23] : memref<8x1xf32, #tpu.memory_space<vmem>>, vector<8x1xf32>
    tpu.vector_store %arg12[%c0_22, %c0_23], %23 {strides = array<i32>} : memref<8x1xf32, #tpu.memory_space<vmem>>, vector<8x1xf32>,
    %c0_24 = arith.constant 0 : index
    %c0_25 = arith.constant 0 : index
    %25 = vector.load %arg3[%c0_24, %c0_25] : memref<8x18xf32, #tpu.memory_space<vmem>>, vector<8x18xf32>
    %c0_26 = arith.constant 0 : index
    %c0_27 = arith.constant 0 : index
    %26 = vector.load %arg4[%c0_26, %c0_27] : memref<8x18xf32, #tpu.memory_space<vmem>>, vector<8x18xf32>
    %27 = arith.addf %25, %26 : vector<8x18xf32>
    %28 = arith.mulf %25, %26 : vector<8x18xf32>
    %29 = arith.addf %27, %28 : vector<8x18xf32>
    %c0_28 = arith.constant 0 : index
    %c0_29 = arith.constant 0 : index
    %30 = vector.load %arg13[%c0_28, %c0_29] : memref<8x18xf32, #tpu.memory_space<vmem>>, vector<8x18xf32>
    tpu.vector_store %arg13[%c0_28, %c0_29], %29 {strides = array<i32>} : memref<8x18xf32, #tpu.memory_space<vmem>>, vector<8x18xf32>,
    return
  }
  func.func @transform_0(%arg0: i32) -> (i32, i32) {
    %c0_i32 = arith.constant 0 : i32
    %c0_i32_0 = arith.constant 0 : i32
    return %arg0, %c0_i32 : i32, i32
  }
  func.func @transform_1(%arg0: i32) -> (i32, i32) {
    %c0_i32 = arith.constant 0 : i32
    %c0_i32_0 = arith.constant 0 : i32
    return %arg0, %c0_i32 : i32, i32
  }
  func.func @transform_2(%arg0: i32) -> (i32, i32) {
    %c0_i32 = arith.constant 0 : i32
    %c0_i32_0 = arith.constant 0 : i32
    return %arg0, %c0_i32 : i32, i32
  }
  func.func @transform_3(%arg0: i32) -> (i32, i32) {
    %c0_i32 = arith.constant 0 : i32
    %c0_i32_0 = arith.constant 0 : i32
    return %arg0, %c0_i32 : i32, i32
  }
  func.func @transform_4(%arg0: i32) -> (i32, i32) {
    %c0_i32 = arith.constant 0 : i32
    %c0_i32_0 = arith.constant 0 : i32
    %c0_i32_1 = arith.constant 0 : i32
    return %c0_i32, %c0_i32_0 : i32, i32
  }
  func.func @transform_5(%arg0: i32) -> (i32, i32) {
    %c0_i32 = arith.constant 0 : i32
    %c0_i32_0 = arith.constant 0 : i32
    %c0_i32_1 = arith.constant 0 : i32
    return %c0_i32, %c0_i32_0 : i32, i32
  }
  func.func @transform_6(%arg0: i32) -> (i32, i32) {
    %c0_i32 = arith.constant 0 : i32
    %c0_i32_0 = arith.constant 0 : i32
    %c0_i32_1 = arith.constant 0 : i32
    return %c0_i32, %c0_i32_0 : i32, i32
  }
  func.func @transform_7(%arg0: i32) -> (i32, i32) {
    %c0_i32 = arith.constant 0 : i32
    %c0_i32_0 = arith.constant 0 : i32
    %c0_i32_1 = arith.constant 0 : i32
    return %c0_i32, %c0_i32_0 : i32, i32
  }
  func.func @transform_8(%arg0: i32) -> (i32, i32) {
    %c0_i32 = arith.constant 0 : i32
    %c0_i32_0 = arith.constant 0 : i32
    %c0_i32_1 = arith.constant 0 : i32
    return %c0_i32, %c0_i32_0 : i32, i32
  }
  func.func @transform_9(%arg0: i32) -> (i32, i32) {
    %c0_i32 = arith.constant 0 : i32
    %c0_i32_0 = arith.constant 0 : i32
    %c0_i32_1 = arith.constant 0 : i32
    return %c0_i32, %c0_i32_0 : i32, i32
  }
  func.func @transform_10(%arg0: i32) -> (i32, i32) {
    %c0_i32 = arith.constant 0 : i32
    %c0_i32_0 = arith.constant 0 : i32
    %c0_i32_1 = arith.constant 0 : i32
    return %c0_i32, %c0_i32_0 : i32, i32
  }
  func.func @transform_11(%arg0: i32) -> (i32, i32) {
    %c0_i32 = arith.constant 0 : i32
    %c0_i32_0 = arith.constant 0 : i32
    return %arg0, %c0_i32 : i32, i32
  }
  func.func @transform_12(%arg0: i32) -> (i32, i32) {
    %c0_i32 = arith.constant 0 : i32
    %c0_i32_0 = arith.constant 0 : i32
    return %arg0, %c0_i32 : i32, i32
  }
}

</mosaic_0001>

<bundles_post_ra>
// kernel: tpu_custom_call.1
= control target key start
LH: loop header
LB: loop body
LE: loop exit
PB: predicated region body
PF: predicated region fallthrough
CT: control target
= control target key end

     0   :  { %s1147_s0 = inlined_call_operand.vmem [shape: f32[8,54], index: 0, kind: input, shape index: {}]   ;;  %s1148_s1 = inlined_call_operand.vmem [shape: f32[8,288], index: 1, kind: input, shape index: {}]   ;;  %s1149_s2 = inlined_call_operand.vmem [shape: f32[8,18], index: 2, kind: input, shape index: {}]   ;;  %s1150_s3 = inlined_call_operand.vmem [shape: f32[8,18], index: 3, kind: input, shape index: {}]   ;;  %s1151_s4 = inlined_call_operand.vmem [shape: f32[54,200], index: 4, kind: input, shape index: {}]   ;;  %s1152_s5 = inlined_call_operand.hbm [shape: f32[288,200], index: 5, kind: input, shape index: {}]   ;;  %s1153_s6 = inlined_call_operand.vmem [shape: f32[1,200], index: 6, kind: input, shape index: {}]   ;;  %s1154_s7 = inlined_call_operand.vmem [shape: f32[200,80], index: 7, kind: input, shape index: {}]   ;;  %s1155_s8 = inlined_call_operand.vmem [shape: f32[1,80], index: 8, kind: input, shape index: {}]   ;;  %s1156_s9 = inlined_call_operand.vmem [shape: f32[80,1], index: 9, kind: input, shape index: {}]   ;;  %s1157_s10 = inlined_call_operand.<no memory space> [shape: f32[1,1], index: 10, kind: input, shape index: {}]   ;;  %s1158_s11 = inlined_call_operand.vmem [shape: f32[8,1], index: 11, kind: output, shape index: {0}]   ;;  %s1159_s12 = inlined_call_operand.hbm [shape: f32[8,18], index: 12, kind: output, shape index: {1}]  }
   0x1   :  { %v18_v0 = vstv %s1157_s10 }
   0x2   :  { %19 = vst [vmem:[#allocation2] sm:$0x1] %v18_v0 }
   0x3   :  { %20 = vsyncpa [#allocation4], 0 }
   0x4   :  { %21 = vsyncpa [#allocation5], 0  ;;  %s853_s23 = smov [#allocation3]   ;;  %s805_s27 = scalar_lea.hbm %s1152_s5, 9216 }
   0x5   :  { %s37_s24 = sshll.u32 %s853_s23, 4  ;;  %p806_p0 = scmp.ne.s32.totalorder %s1152_s5, %s805_s27  ;;  %s38_s24 = int_to_ptr.vmem [resolvable:$true] %s37_s24 }
   0x6   :  { %p809_p1 = scmp.lt.u32.totalorder %s805_s27, %s1152_s5 }
   0x8   :  { %p811_p2 = pnand %p809_p1, %p806_p0 }
   0xa   :  { %814 = shalt.err (!%p811_p2)
}
   0xb   :  { %s815_s10 = scalar_lea.vmem %s38_s24, 9216  ;;  %p820_p4 = scmp.lt.s32.totalorder %s38_s24, %s38_s24 }
   0xc   :  { %p816_p3 = scmp.ne.s32.totalorder %s38_s24, %s815_s10  ;;  %p821_p5 = scmp.lt.s32.totalorder %s815_s10, %s815_s10 }
   0xe   :  { %p822_p6 = por %p821_p5, %p820_p4 }
  0x10   :  { %p823_p7 = pnand %p822_p6, %p816_p3 }
  0x12   :  { %826 = shalt.err (!%p823_p7)
}
  0x13   :  { %s854_s14 = smov 256   ;;  %s855_s15 = smov 16  }
  0x14   :  { %43 = dma.hbm_to_vmem [thread:$0]  %s1152_s5, 9216, %s38_s24, [#allocation4], %s854_s14, %s854_s14, %s855_s15  }
  0x15   :  { %849 = dma.done.wait [#allocation4], 9216  }
  0x16   :  { %850 = vsyncadd [#allocation4], 4294958080  ;;  %v856_v1 = vmov 0.0   ;;  %v76_v2 = vld [vmem:[#allocation3 + $0x8] sm:$0xff]  ;;  %v78_v3 = vld [vmem:[#allocation3 + $0x18] sm:$0xff]  ;;  %vm147_vm0 = vcmask 261120  }
  0x17   :  { %286 = vmatprep.mubr.f32.mxu1 %v856_v1  ;;  %v75_v4 = vld [vmem:[#allocation3] sm:$0xff]  ;;  %v659_v5 = vpack.c.bf16 %v78_v3, %v76_v2  ;;  %v77_v6 = vld [vmem:[#allocation3 + $0x10] sm:$0xff]  ;;  %v80_v7 = vld [vmem:[#allocation3 + $0x28] sm:$0xff]  ;;  %vm297_vm1 = vcmask 1045504   ;;  %vm293_vm2 = vcmask 441344   ;;  %vm423_vm3 = vcmask 588800  }
  0x18   :  { %v82_v8 = vld [vmem:[#allocation3 + $0x38] sm:$0xff]  ;;  %v661_v9 = vpack.c.bf16 %v77_v6, %v75_v4  ;;  %v79_v11 = vld [vmem:[#allocation3 + $0x20] sm:$0xff]  ;;  %v81_v12 = vld [vmem:[#allocation3 + $0x30] sm:$0xff]  ;;  %vm858_vm4 = vmmov 0   ;;  %vm515_vm5 = vcmask 654336   ;;  %vm596_vm6 = vcmask 146432  }
  0x19   :  { %v663_v10 = vpack.c.bf16 %v82_v8, %v80_v7  ;;  %v84_v13 = vld [vmem:[#allocation3 + $0x48] sm:$0xff]  ;;  %660 = vmatprep.subr.bf16.mxu0 %v659_v5  ;;  %v86_v14 = vld [vmem:[#allocation3 + $0x58] sm:$0xff]  ;;  %v665_v15 = vpack.c.bf16 %v81_v12, %v79_v11  ;;  %v83_v17 = vld [vmem:[#allocation3 + $0x40] sm:$0xff]  ;;  %v857_v8 = vmov 0.0|0.0  }
  0x1a   :  { %662 = vmatpush1.bf16.msra.mxu0 %v661_v9  ;;  %v667_v16 = vpack.c.bf16 %v86_v14, %v84_v13  ;;  %v85_v18 = vld [vmem:[#allocation3 + $0x50] sm:$0xff]  ;;  %v88_v19 = vld [vmem:[#allocation3 + $0x68] sm:$0xff]  ;;  %v90_v20 = vld [vmem:[#allocation3 + $0x78] sm:$0xff] }
  0x1b   :  { %664 = vmatprep.subr.bf16.mxu0 %v663_v10  ;;  %v669_v21 = vpack.c.bf16 %v85_v18, %v83_v17  ;;  %v671_v22 = vpack.c.bf16 %v90_v20, %v88_v19  ;;  %v87_v23 = vld [vmem:[#allocation3 + $0x60] sm:$0xff]  ;;  %v89_v24 = vld [vmem:[#allocation3 + $0x70] sm:$0xff]  ;;  %v92_v25 = vld [vmem:[#allocation3 + $0x88] sm:$0xff] }
  0x1c   :  { %v94_v26 = vld [vmem:[#allocation3 + $0x98] sm:$0xff]  ;;  %v673_v27 = vpack.c.bf16 %v89_v24, %v87_v23  ;;  %v91_v29 = vld [vmem:[#allocation3 + $0x80] sm:$0xff]  ;;  %v93_v30 = vld [vmem:[#allocation3 + $0x90] sm:$0xff] }
  0x1d   :  { %v675_v28 = vpack.c.bf16 %v94_v26, %v92_v25  ;;  %v96_v31 = vld [vmem:[#allocation3 + $0xa8] sm:$0xff]  ;;  %v98_v32 = vld [vmem:[#allocation3 + $0xb8] sm:$0xff]  ;;  %v677_v33 = vpack.c.bf16 %v93_v30, %v91_v29  ;;  %v95_v35 = vld [vmem:[#allocation3 + $0xa0] sm:$0xff] }
  0x1e   :  { %666 = vmatpush1.bf16.msra.mxu0 %v665_v15  ;;  %v679_v34 = vpack.c.bf16 %v98_v32, %v96_v31  ;;  %v97_v36 = vld [vmem:[#allocation3 + $0xb0] sm:$0xff]  ;;  %v100_v37 = vld [vmem:[#allocation3 + $0xc8] sm:$0xff]  ;;  %v102_v38 = vld [vmem:[#allocation3 + $0xd8] sm:$0xff] }
  0x1f   :  { %668 = vmatprep.subr.bf16.mxu0 %v667_v16  ;;  %v140_v39 = vld [vmem:[#allocation3 + $0x208] sm:$0xff]  ;;  %v142_v40 = vld [vmem:[#allocation3 + $0x218] sm:$0xff]  ;;  %v681_v41 = vpack.c.bf16 %v97_v36, %v95_v35  ;;  %v99_v42 = vld [vmem:[#allocation3 + $0xc0] sm:$0xff]  ;;  %v683_v45 = vpack.c.bf16 %v102_v38, %v100_v37 }
  0x20   :  { %v723_v43 = vpack.c.bf16 %v142_v40, %v140_v39  ;;  %v139_v44 = vld [vmem:[#allocation3 + $0x200] sm:$0xff]  ;;  %v101_v46 = vld [vmem:[#allocation3 + $0xd0] sm:$0xff]  ;;  %v104_v47 = vld [vmem:[#allocation3 + $0xe8] sm:$0xff] }
  0x21   :  { %v141_v48 = vld [vmem:[#allocation3 + $0x210] sm:$0xff]  ;;  %v106_v49 = vld [vmem:[#allocation3 + $0xf8] sm:$0xff]  ;;  %v144_v51 = vld [vmem:[#allocation3 + $0x228] sm:$0xff]  ;;  %v685_v56 = vpack.c.bf16 %v101_v46, %v99_v42 }
  0x22   :  { %670 = vmatpush1.bf16.msra.mxu0 %v669_v21  ;;  %724 = vmatprep.subr.bf16.mxu1 %v723_v43  ;;  %v725_v50 = vpack.c.bf16 %v141_v48, %v139_v44  ;;  %v146_v52 = vld [vmem:[#allocation3 + $0x238] sm:$0xff]  ;;  %v143_v54 = vld [vmem:[#allocation3 + $0x220] sm:$0xff]  ;;  %v145_v55 = vld [vmem:[#allocation3 + $0x230] sm:$0xff]  ;;  %v687_v59 = vpack.c.bf16 %v106_v49, %v104_v47 }
  0x23   :  { %672 = vmatprep.subr.bf16.mxu0 %v671_v22  ;;  %v727_v53 = vpack.c.bf16 %v146_v52, %v144_v51  ;;  %v729_v57 = vpack.c.bf16 %v145_v55, %v143_v54  ;;  %v73_v58 = vld [vmem:[%s1148_s1 + $0x8] sm:$0xff]  ;;  %v105_v61 = vld [vmem:[#allocation3 + $0xf0] sm:$0xff]  ;;  %v110_v63 = vld [vmem:[#allocation3 + $0x118] sm:$0xff] }
  0x24   :  { %726 = vmatpush1.bf16.msra.mxu1 %v725_v50  ;;  %v103_v60 = vld [vmem:[#allocation3 + $0xe0] sm:$0xff]  ;;  %v108_v62 = vld [vmem:[#allocation3 + $0x108] sm:$0xff]  ;;  %215 = vmatprep.mubr.f32.mxu0 %v73_v58  ;;  %v109_v5 = vld [vmem:[#allocation3 + $0x110] sm:$0xff] }
  0x25   :  { %728 = vmatprep.subr.bf16.mxu1 %v727_v53  ;;  %v689_v0 = vpack.c.bf16 %v105_v61, %v103_v60  ;;  %v107_v2 = vld [vmem:[#allocation3 + $0x100] sm:$0xff]  ;;  %v74_v3 = vld [vmem:[%s1148_s1 + $0x10] sm:$0xff]  ;;  %v691_v4 = vpack.c.bf16 %v110_v63, %v108_v62  ;;  %v114_v7 = vld [vmem:[#allocation3 + $0x138] sm:$0xff] }
  0x26   :  { %674 = vmatpush1.bf16.msra.mxu0 %v673_v27  ;;  %v112_v6 = vld [vmem:[#allocation3 + $0x128] sm:$0xff]  ;;  %v391_v9 = vld [vmem:[%s1154_s7] sm:$0xff]  ;;  %v394_v13 = vld [vmem:[%s1154_s7 + $0x18] sm:$0xff]  ;;  %v693_v14 = vpack.c.bf16 %v109_v5, %v107_v2 }
  0x27   :  { %676 = vmatprep.subr.bf16.mxu0 %v675_v28  ;;  %v392_v10 = vld [vmem:[%s1154_s7 + $0x8] sm:$0xff]  ;;  %v393_v11 = vld [vmem:[%s1154_s7 + $0x10] sm:$0xff]  ;;  %v695_v15 = vpack.c.bf16 %v114_v7, %v112_v6  ;;  %v118_v20 = vld [vmem:[#allocation3 + $0x158] sm:$0xff] }
  0x28   :  { %730 = vmatpush1.bf16.msra.mxu1 %v729_v57  ;;  %v744_v12 = vpack.c.bf16 %v392_v10, %v391_v9  ;;  %v111_v16 = vld [vmem:[#allocation3 + $0x120] sm:$0xff]  ;;  %v113_v17 = vld [vmem:[#allocation3 + $0x130] sm:$0xff]  ;;  %v116_v18 = vld [vmem:[#allocation3 + $0x148] sm:$0xff]  ;;  %v747_v19 = vpack.c.bf16 %v394_v13, %v393_v11 }
  0x29   :  { %743 = vmatprep.subr.bf16.mxu1 %v857_v8  ;;  %v395_v21 = vld [vmem:[%s1154_s7 + $0x20] sm:$0xff]  ;;  %v396_v22 = vld [vmem:[%s1154_s7 + $0x28] sm:$0xff]  ;;  %v697_v23 = vpack.c.bf16 %v113_v17, %v111_v16  ;;  %v699_v24 = vpack.c.bf16 %v118_v20, %v116_v18  ;;  %v117_v26 = vld [vmem:[#allocation3 + $0x150] sm:$0xff] }
  0x2a   :  { %678 = vmatpush1.bf16.msra.mxu0 %v677_v33  ;;  %v115_v25 = vld [vmem:[#allocation3 + $0x140] sm:$0xff]  ;;  %v120_v27 = vld [vmem:[#allocation3 + $0x168] sm:$0xff]  ;;  %v750_v28 = vpack.c.bf16 %v396_v22, %v395_v21  ;;  %v122_v29 = vld [vmem:[#allocation3 + $0x178] sm:$0xff] }
  0x2b   :  { %680 = vmatprep.subr.bf16.mxu0 %v679_v34  ;;  %617 = vmatmul.mubr.msk.f32.vlgmr.msra.gmra.mrb[0].mxu1 %vm147_vm0, %v74_v3  ;;  %v397_v30 = vld [vmem:[%s1154_s7 + $0x30] sm:$0xff]  ;;  %v398_v31 = vld [vmem:[%s1154_s7 + $0x38] sm:$0xff]  ;;  %v701_v32 = vpack.c.bf16 %v117_v26, %v115_v25  ;;  %v703_v33 = vpack.c.bf16 %v122_v29, %v120_v27  ;;  %v119_v34 = vld [vmem:[#allocation3 + $0x160] sm:$0xff] }
  0x2c   :  { %745 = vmatpush1.bf16.msra.mxu1 %v744_v12  ;;  %v121_v35 = vld [vmem:[#allocation3 + $0x170] sm:$0xff]  ;;  %v124_v36 = vld [vmem:[#allocation3 + $0x188] sm:$0xff]  ;;  %v753_v37 = vpack.c.bf16 %v398_v31, %v397_v30  ;;  %v126_v38 = vld [vmem:[#allocation3 + $0x198] sm:$0xff] }
  0x2d   :  { %746 = vmatprep.subr.bf16.mxu1 %v857_v8  ;;  %v399_v39 = vld [vmem:[%s1154_s7 + $0x40] sm:$0xff]  ;;  %v400_v40 = vld [vmem:[%s1154_s7 + $0x48] sm:$0xff]  ;;  %v707_v42 = vpack.c.bf16 %v126_v38, %v124_v36  ;;  %v125_v44 = vld [vmem:[#allocation3 + $0x190] sm:$0xff] }
  0x2e   :  { %682 = vmatpush1.bf16.msra.mxu0 %v681_v41  ;;  %v705_v41 = vpack.c.bf16 %v121_v35, %v119_v34  ;;  %v123_v43 = vld [vmem:[#allocation3 + $0x180] sm:$0xff]  ;;  %v756_v46 = vpack.c.bf16 %v400_v40, %v399_v39  ;;  %v130_v47 = vld [vmem:[#allocation3 + $0x1b8] sm:$0xff]  ;;  %v401_v48 = vld [vmem:[%s1154_s7 + $0x50] sm:$0xff] }
  0x2f   :  { %684 = vmatprep.subr.bf16.mxu0 %v683_v45  ;;  %v128_v45 = vld [vmem:[#allocation3 + $0x1a8] sm:$0xff]  ;;  %v402_v49 = vld [vmem:[%s1154_s7 + $0x58] sm:$0xff]  ;;  %v709_v50 = vpack.c.bf16 %v125_v44, %v123_v43  ;;  %v127_v52 = vld [vmem:[#allocation3 + $0x1a0] sm:$0xff] }
  0x30   :  { %748 = vmatpush1.bf16.msra.mxu1 %v747_v19  ;;  %v711_v51 = vpack.c.bf16 %v130_v47, %v128_v45  ;;  %v129_v53 = vld [vmem:[#allocation3 + $0x1b0] sm:$0xff]  ;;  %v132_v54 = vld [vmem:[#allocation3 + $0x1c8] sm:$0xff]  ;;  %v759_v55 = vpack.c.bf16 %v402_v49, %v401_v48  ;;  %v403_v57 = vld [vmem:[%s1154_s7 + $0x60] sm:$0xff] }
  0x31   :  { %749 = vmatprep.subr.bf16.mxu1 %v857_v8  ;;  %v404_v58 = vld [vmem:[%s1154_s7 + $0x68] sm:$0xff]  ;;  %v133_v62 = vld [vmem:[#allocation3 + $0x1d0] sm:$0xff]  ;;  %v138_v2 = vld [vmem:[#allocation3 + $0x1f8] sm:$0xff] }
  0x32   :  { %686 = vmatpush1.bf16.msra.mxu0 %v685_v56  ;;  %v134_v56 = vld [vmem:[#allocation3 + $0x1d8] sm:$0xff]  ;;  %v131_v61 = vld [vmem:[#allocation3 + $0x1c0] sm:$0xff]  ;;  %v762_v63 = vpack.c.bf16 %v404_v58, %v403_v57  ;;  %v137_v6 = vld [vmem:[#allocation3 + $0x1f0] sm:$0xff] }
  0x33   :  { %688 = vmatprep.subr.bf16.mxu0 %v687_v59  ;;  %v713_v59 = vpack.c.bf16 %v129_v53, %v127_v52  ;;  %v715_v60 = vpack.c.bf16 %v134_v56, %v132_v54  ;;  %v717_v3 = vpack.c.bf16 %v133_v62, %v131_v61  ;;  %v135_v5 = vld [vmem:[#allocation3 + $0x1e0] sm:$0xff]  ;;  %v61_v9 = vld [vmem:[%s1151_s4 + $0x18] sm:$0xff]  ;;  %v60_v13 = vld [vmem:[%s1151_s4 + $0x10] sm:$0xff]  ;;  %v377_v52 = vlaneseq }
  0x34   :  { %751 = vmatpush1.bf16.msra.mxu1 %v750_v28  ;;  %v59_v7 = vld [vmem:[%s1151_s4 + $0x8] sm:$0xff]  ;;  %v721_v10 = vpack.c.bf16 %v137_v6, %v135_v5  ;;  %v58_v12 = vld [vmem:[%s1151_s4] sm:$0xff]  ;;  %v64_v20 = vld [vmem:[%s1151_s4 + $0x30] sm:$0xff] }
  0x35   :  { %752 = vmatprep.subr.bf16.mxu1 %v857_v8  ;;  %v731_v11 = vpack.c.bf16 %v61_v9, %v59_v7  ;;  %v72_v16 = vld [vmem:[%s1148_s1] sm:$0xff]  ;;  %v733_v17 = vpack.c.bf16 %v60_v13, %v58_v12  ;;  %v67_v21 = vld [vmem:[%s1151_s4 + $0x48] sm:$0xff]  ;;  %v69_v22 = vld [vmem:[%s1151_s4 + $0x58] sm:$0xff]  ;;  %v378_v54 = vshrl.u32 %v377_v52, 7 }
  0x36   :  { %690 = vmatpush1.bf16.msra.mxu0 %v689_v0  ;;  %v136_v0 = vld [vmem:[#allocation3 + $0x1e8] sm:$0xff]  ;;  %v62_v19 = vld [vmem:[%s1151_s4 + $0x20] sm:$0xff]  ;;  %v410_v38 = vld [vmem:[%s1154_s7 + $0x98] sm:$0xff] }
  0x37   :  { %692 = vmatprep.subr.bf16.mxu0 %v691_v4  ;;  %v719_v4 = vpack.c.bf16 %v138_v2, %v136_v0  ;;  %v66_v25 = vld [vmem:[%s1151_s4 + $0x40] sm:$0xff]  ;;  %v68_v26 = vld [vmem:[%s1151_s4 + $0x50] sm:$0xff]  ;;  %v71_v28 = vld [vmem:[%s1151_s4 + $0x68] sm:$0x3f]  ;;  %v383_v57 = vsub.s32 1, %v378_v54 }
  0x38   :  { %754 = vmatpush1.bf16.msra.mxu1 %v753_v37  ;;  %v741_v27 = vpack.c.bf16 %v68_v26, %v66_v25  ;;  %v70_v29 = vld [vmem:[%s1151_s4 + $0x60] sm:$0x3f]  ;;  %v405_v31 = vld [vmem:[%s1154_s7 + $0x70] sm:$0xff]  ;;  %v408_v35 = vld [vmem:[%s1154_s7 + $0x88] sm:$0xff] }
  0x39   :  { %755 = vmatprep.subr.bf16.mxu1 %v857_v8  ;;  %v57_v30 = vld [vmem:[%s1147_s0] sm:$0xff]  ;;  %v409_v37 = vld [vmem:[%s1154_s7 + $0x90] sm:$0xff]  ;;  %v414_v44 = vld [vmem:[%s1154_s7 + $0xb8] sm:$0xff] }
  0x3a   :  { %694 = vmatpush1.bf16.msra.mxu0 %v693_v14  ;;  %v63_v14 = vld [vmem:[%s1151_s4 + $0x28] sm:$0xff]  ;;  %v407_v34 = vld [vmem:[%s1154_s7 + $0x80] sm:$0xff]  ;;  %v771_v39 = vpack.c.bf16 %v410_v38, %v409_v37  ;;  %v413_v43 = vld [vmem:[%s1154_s7 + $0xb0] sm:$0xff] }
  0x3b   :  { %696 = vmatprep.subr.bf16.mxu0 %v695_v15  ;;  %v65_v15 = vld [vmem:[%s1151_s4 + $0x38] sm:$0xff]  ;;  %v768_v36 = vpack.c.bf16 %v408_v35, %v407_v34  ;;  %v411_v40 = vld [vmem:[%s1154_s7 + $0xa0] sm:$0xff]  ;;  %v777_v45 = vpack.c.bf16 %v414_v44, %v413_v43  ;;  %v500_v9 = vld [vmem:[%s1156_s9 + $0x10] sm:$0xff] }
  0x3c   :  { %757 = vmatpush1.bf16.msra.mxu1 %v756_v46  ;;  %v735_v18 = vpack.c.bf16 %v65_v15, %v63_v14  ;;  %v415_v46 = vld [vmem:[%s1154_s7 + $0xc0] sm:$0xff]  ;;  %v503_v13 = vld [vmem:[%s1156_s9 + $0x28] sm:$0xff]  ;;  %v504_v15 = vld [vmem:[%s1156_s9 + $0x30] sm:$0xff] }
  0x3d   :  { %758 = vmatprep.subr.bf16.mxu1 %v857_v8  ;;  %v375_v56 = vld [vmem:[%s1153_s6] sm:$0x3] }
  0x3e   :  { %698 = vmatpush1.bf16.msra.mxu0 %v697_v23  ;;  %v737_v23 = vpack.c.bf16 %v64_v20, %v62_v19  ;;  %v498_v2 = vld [vmem:[%s1156_s9] sm:$0xff]  ;;  %v507_v19 = vld [vmem:[%s1156_s9 + $0x48] sm:$0xff] }
  0x3f   :  { %700 = vmatprep.subr.bf16.mxu0 %v699_v24  ;;  %v739_v24 = vpack.c.bf16 %v69_v22, %v67_v21  ;;  %v502_v12 = vld [vmem:[%s1156_s9 + $0x20] sm:$0xff] }
  0x40   :  { %760 = vmatpush1.bf16.msra.mxu1 %v759_v55  ;;  %v379_v55 = vsub.s32 0, %v378_v54  ;;  %v786_v14 = vpack.c.bf16 %v503_v13, %v502_v12  ;;  %v621_v21 = vld [vmem:[%s1155_s8] ss:$0 sm:$0xff] }
  0x41   :  { %761 = vmatprep.subr.bf16.mxu1 %v857_v8  ;;  %v591_v25 = vld [vmem:[%s1149_s2] sm:$0xff] }
  0x42   :  { %702 = vmatpush1.bf16.msra.mxu0 %v701_v32  ;;  %v406_v32 = vld [vmem:[%s1154_s7 + $0x78] sm:$0xff]  ;;  %v380_v58 = vrot.slane %v375_v56, %v379_v55  ;;  %v592_v26 = vld [vmem:[%s1150_s3] sm:$0xff] }
  0x43   :  { %704 = vmatprep.subr.bf16.mxu0 %v703_v33  ;;  %v765_v33 = vpack.c.bf16 %v406_v32, %v405_v31 }
  0x44   :  { %763 = vmatpush1.bf16.msra.mxu1 %v762_v63 }
  0x45   :  { %764 = vmatprep.subr.bf16.mxu1 %v857_v8 }
  0x46   :  { %706 = vmatpush1.bf16.msra.mxu0 %v705_v41  ;;  %v412_v41 = vld [vmem:[%s1154_s7 + $0xa8] sm:$0xff]  ;;  %s859_s7 = smov [#allocation6]  }
  0x47   :  { %708 = vmatprep.subr.bf16.mxu0 %v707_v42  ;;  %v774_v42 = vpack.c.bf16 %v412_v41, %v411_v40  ;;  %s606_s8 = sshll.u32 %s859_s7, 4  ;;  %s607_s8 = int_to_ptr.vmem [resolvable:$true] %s606_s8 }
  0x48   :  { %766 = vmatpush1.bf16.msra.mxu1 %v765_v33  ;;  %s827_s21 = scalar_lea.vmem %s607_s8, 128  ;;  %p832_p9 = scmp.lt.s32.totalorder %s607_s8, %s607_s8 }
  0x49   :  { %767 = vmatprep.subr.bf16.mxu1 %v857_v8  ;;  %p828_p8 = scmp.ne.s32.totalorder %s607_s8, %s827_s21  ;;  %p833_p10 = scmp.lt.s32.totalorder %s827_s21, %s827_s21 }
  0x4a   :  { %710 = vmatpush1.bf16.msra.mxu0 %v709_v50 }
  0x4b   :  { %712 = vmatprep.subr.bf16.mxu0 %v711_v51  ;;  %p834_p11 = por %p833_p10, %p832_p9 }
  0x4c   :  { %769 = vmatpush1.bf16.msra.mxu1 %v768_v36 }
  0x4d   :  { %770 = vmatprep.subr.bf16.mxu1 %v857_v8  ;;  %p835_p12 = pnand %p834_p11, %p828_p8 }
  0x4e   :  { %714 = vmatpush1.bf16.msra.mxu0 %v713_v59 }
  0x4f   :  { %716 = vmatprep.subr.bf16.mxu0 %v715_v60  ;;  %v384_v60 = vrot.slane %v375_v56, %v383_v57 }
  0x50   :  { %772 = vmatpush1.bf16.msra.mxu1 %v771_v39 }
  0x51   :  { %773 = vmatprep.subr.bf16.mxu1 %v857_v8 }
  0x52   :  { %718 = vmatpush1.bf16.msra.mxu0 %v717_v3  ;;  %v499_v3 = vld [vmem:[%s1156_s9 + $0x8] sm:$0xff] }
  0x53   :  { %720 = vmatprep.subr.bf16.mxu0 %v719_v4  ;;  %v780_v6 = vpack.c.bf16 %v499_v3, %v498_v2 }
  0x54   :  { %775 = vmatpush1.bf16.msra.mxu1 %v774_v42 }
  0x55   :  { %776 = vmatprep.subr.bf16.mxu1 %v857_v8 }
  0x56   :  { %722 = vmatpush1.bf16.msra.mxu0 %v721_v10  ;;  %v501_v10 = vld [vmem:[%s1156_s9 + $0x18] sm:$0xff] }
  0x57   :  { %732 = vmatprep.subr.bf16.mxu0 %v731_v11  ;;  %v783_v11 = vpack.c.bf16 %v501_v10, %v500_v9 }
  0x58   :  { %778 = vmatpush1.bf16.msra.mxu1 %v777_v45 }
  0x59   :  { %216 = vmatmul.mubr.f32.vlgmr.msra.gmra.mrb[0].mxu0 %v72_v16  ;;  %475 = vmatprep.subr.mxu1 %v856_v1  ;;  %v505_v16 = vld [vmem:[%s1156_s9 + $0x38] sm:$0xff] }
  0x5a   :  { %734 = vmatpush1.bf16.msra.mxu0 %v733_v17  ;;  %368 = vmatprep.mubr.f32.mxu0 %v856_v1  ;;  %v789_v17 = vpack.c.bf16 %v505_v16, %v504_v15 }
  0x5b   :  { %736 = vmatprep.subr.bf16.mxu0 %v735_v18  ;;  %v506_v18 = vld [vmem:[%s1156_s9 + $0x40] sm:$0xff] }
  0x5c   :  { %476 = vmatpush1.msra.mxu1 %v415_v46  ;;  %v792_v20 = vpack.c.bf16 %v507_v19, %v506_v18 }
  0x5d   :  { %779 = vmatprep.subr.bf16.mxu1 %v857_v8 }
  0x5e   :  { %738 = vmatpush1.bf16.msra.mxu0 %v737_v23 }
  0x5f   :  { %740 = vmatprep.subr.bf16.mxu0 %v739_v24 }
  0x62   :  { %742 = vmatpush1.bf16.msra.mxu0 %v741_v27  ;;  %v593_v27 = vadd.f32 %v592_v26, %v591_v25 }
  0x63   :  { %618 = vmatprep.subr.msk.mxu0 %vm297_vm1, %v71_v28 }
  0x66   :  { %619 = vmatpush1.msk.msra.mxu0 %vm297_vm1, %v70_v29 }
  0x67   :  { %620 = vmatmul.mubr.msk.f32.vlgmr.msra.gmra.mrb[2].mxu0 %vm293_vm2, %v57_v30 }
  0xfe   :  { %v288_v47 = vpop.f32.mrb[0].mxu1 }
  0xff   :  { %v290_v48 = vpop.f32.mrb[1].mxu1 }
 0x12c   :  { %v217_v49 = vpop.f32.mrb[0].mxu0 }
 0x12d   :  { %v289_v50 = vadd.f32 %v288_v47, %v217_v49  ;;  %v219_v51 = vpop.f32.mrb[1].mxu0 }
 0x12e   :  { %v291_v53 = vadd.f32 %v290_v48, %v219_v51 }
 0x13a   :  { %v370_v59 = vpop.f32.mrb[2].mxu0 }
 0x13b   :  { %v371_v61 = vadd.f32 %v370_v59, %v289_v50  ;;  %v372_v62 = vpop.f32.mrb[3].mxu0 }
 0x13c   :  { %v373_v63 = vadd.f32 %v372_v62, %v291_v53 }
 0x13d   :  { %v387_v0 = vadd.f32 %v380_v58, %v371_v61 }
 0x13e   :  { %v388_v4 = vadd.f32 %v384_v60, %v373_v63 }
 0x13f   :  { %v389_v7 = vmax.f32 %v387_v0, 0.0 }
 0x140   :  { %v390_v5 = vmax.f32 %v388_v4, 0.0 }
 0x142   :  { %622 = vmatprep.mubr.msk.f32.mxu1 %vm423_vm3, %v390_v5 }
 0x143   :  { %492 = vmatmul.mubr.f32.vlgmr.msra.gmra.mrb[2].mxu1 %v389_v7 }
 0x144   :  { %781 = vmatpush3.bf16.msra.mxu1 %v780_v6  ;;  %656 = vmatprep.mubr.msk.f32.mxu1 %vm858_vm4, %v856_v1  ;;  %v594_v1 = vmul.f32 %v592_v26, %v591_v25 }
 0x145   :  { %782 = vmatprep.subr.bf16.mxu1 %v857_v8 }
 0x146   :  { %v595_v28 = vadd.f32 %v594_v1, %v593_v27 }
 0x148   :  { %784 = vmatpush3.bf16.msra.mxu1 %v783_v11  ;;  %597 = vst.msk [vmem:[#allocation6] sm:$0xff] %vm596_vm6, %v595_v28 }
 0x149   :  { %785 = vmatprep.subr.bf16.mxu1 %v857_v8 }
 0x14c   :  { %787 = vmatpush3.bf16.msra.mxu1 %v786_v14 }
 0x14d   :  { %788 = vmatprep.subr.bf16.mxu1 %v857_v8 }
 0x150   :  { %790 = vmatpush3.bf16.msra.mxu1 %v789_v17 }
 0x151   :  { %791 = vmatprep.subr.bf16.mxu1 %v857_v8 }
 0x154   :  { %793 = vmatpush3.bf16.msra.mxu1 %v792_v20 }
 0x216   :  { %v493_v22 = vpop.f32.mrb[2].mxu1 }
 0x217   :  { %v494_v23 = vadd.f32 %v621_v21, %v493_v22  ;;  %v495_v8 = vpop.f32.mrb[3].mxu1 }
 0x219   :  { %v497_v24 = vmax.f32 %v494_v23, 0.0 }
 0x21b   :  { %657 = vmatmul.mubr.msk.f32.vlgmr.msra.gmra.mrb[4].mxu1 %vm515_vm5, %v497_v24 }
 0x21c   :  { %838 = shalt.err (!%p835_p12)
}
 0x21d   :  { %s839_s23 = scalar_lea.hbm %s1159_s12, 128 }
 0x21e   :  { %p840_p13 = scmp.ne.s32.totalorder %s1159_s12, %s839_s23  ;;  %p843_p0 = scmp.lt.u32.totalorder %s839_s23, %s1159_s12 }
 0x220   :  { %p845_p1 = pnand %p843_p0, %p840_p13 }
 0x222   :  { %848 = shalt.err (!%p845_p1)
}
 0x223   :  { %609 = dma.vmem_to_hbm [thread:$0]  %s607_s8, 128, %s1159_s12, [#allocation5]   ;;  %v623_v29 = vld [vmem:[#allocation2] ss:$0 sm:$0xff]  ;;  %vm589_vm7 = vcmask 7168  }
 0x2ee   :  { %v585_v30 = vpop.f32.mrb[4].mxu1 }
 0x2ef   :  { %v586_v31 = vadd.f32 %v623_v29, %v585_v30  ;;  %v658_v32 = vpop.f32.mrb[5].mxu1 }
 0x2f1   :  { %590 = vst.msk [vmem:[%s1158_s11] sm:$0xff] %vm589_vm7, %v586_v31 }
 0x2f2   :  { %851 = dma.done.wait [#allocation5], 128  }
 0x2f3   :  { %852 = vsyncadd [#allocation5], 4294967168 }
 0x2f4   :  { %615 = vsyncpa [#allocation4], 1 }
 0x2f5   :  { %616 = vsyncpa [#allocation5], 1 }

</bundles_post_ra>
